<compile_context>
chip_gen: v7x
topology: tpu7x:2x2x1
jax: 0.10.0
libtpu: 0.0.40
codegen_flags: <defaults>
</compile_context>

<pallas_src>
import jax
import jax.numpy as jnp
from jax.experimental import pallas as pl
from jax.experimental.pallas import tpu as pltpu


def _round_up(x, m):
    return ((x + m - 1) // m) * m


def _largest_dividing_tile(dim, max_tile, unit):
    """Largest multiple of `unit` that divides `dim` and is <= max_tile, else None."""
    k_max = min(max_tile, dim) // unit
    for k in range(k_max, 0, -1):
        t = k * unit
        if dim % t == 0:
            return t
    return None


def _grad_penalty_kernel(alpha_ref, real_ref, fake_ref, w1_ref, gw_ref,
                         out_ref, h_acc):
    # alpha: (tb, 1) f32      real/fake: (tb, td) input dtype
    # w1: (td, HIDP) input dtype   gw: (HIDP, HIDP) f32 = (W1^T W1) .* (W2^T W2)
    # out: (tb, 128) f32      h_acc scratch: (tb, HIDP) f32
    k = pl.program_id(1)

    @pl.when(k == 0)
    def _init():
        h_acc[...] = jnp.zeros_like(h_acc)

    # Mix after the matmul (linear): no per-element casts/lerp on the big
    # streamed tiles; inputs go to the MXU in their native dtype.
    alpha = alpha_ref[...]                                          # (tb, 1)
    h_r = jnp.dot(real_ref[...], w1_ref[...],
                  preferred_element_type=jnp.float32)               # (tb, HIDP)
    h_f = jnp.dot(fake_ref[...], w1_ref[...],
                  preferred_element_type=jnp.float32)               # (tb, HIDP)
    h_acc[...] += alpha * h_r + (1.0 - alpha) * h_f

    @pl.when(k == pl.num_programs(1) - 1)
    def _finalize():
        h = h_acc[...]                                              # (tb, HIDP)
        # NOTE: relu subgradient at h == 0 taken as 0 (jax.grad of maximum
        # uses 0.5 at exact ties -- measure-zero difference).
        mask = (h > 0.0).astype(jnp.float32)                        # (tb, HIDP)
        # ||(mask*W2) @ W1^T||^2 as a quadratic form in the 0/1 mask.
        sq = jnp.sum(jnp.dot(mask, gw_ref[...],
                             preferred_element_type=jnp.float32) * mask,
                     axis=1, keepdims=True)                         # (tb, 1)
        per = (jnp.sqrt(sq) - 1.0) ** 2                             # (tb, 1)
        # Lane-dense store (unmasked vst); the wrapper reads column 0.
        out_ref[...] = jnp.broadcast_to(per, out_ref.shape)


def grad_penalty(real_nchw, fake_nchw, alpha, w1, w2, weight=1.0,
                 block_b=256, block_d=2048):
    """Pallas implementation of GradPenalty.forward for a fixed MLP disc."""
    B = real_nchw.shape[0]
    D = real_nchw.size // B
    HID = w1.shape[1]
    HIDP = _round_up(HID, 128)
    in_dtype = real_nchw.dtype

    # Reshape only (metadata) -- no dtype pre-cast / no pad of the big tensors
    # on the common path.
    real_f = real_nchw.reshape(B, D)
    fake_f = fake_nchw.reshape(B, D).astype(in_dtype)
    alpha_f = alpha.reshape(B, 1).astype(jnp.float32)

    # Tiny discriminator-side precompute (once, in the wrapper):
    #   gram_w[j,k] = W2[j] * (W1^T W1)[j,k] * W2[k]
    w1_f32 = w1.astype(jnp.float32)
    w2_f32 = w2.reshape(1, HID).astype(jnp.float32)
    gram_w = (jnp.dot(w1_f32.T, w1_f32, preferred_element_type=jnp.float32)
              * (w2_f32.T @ w2_f32))                                # (HID, HID)
    if HIDP != HID:
        gram_w = jnp.pad(gram_w, ((0, HIDP - HID), (0, HIDP - HID)))

    # W1 streamed in the same dtype as the inputs so the MXU runs natively.
    w1_p = w1.astype(in_dtype)
    if HIDP != HID:
        w1_p = jnp.pad(w1_p, ((0, 0), (0, HIDP - HID)))

    # ---- feature (reduction) tiling: prefer a tile that divides D exactly so
    # the big (B, D) tensors are never copied/padded in HBM.
    td = _largest_dividing_tile(D, block_d, 128)
    d_pad = D
    if td is None:
        # Rare fallback (D not a multiple of 128): pad the feature dim.
        d_pad = _round_up(D, 128)
        td = _largest_dividing_tile(d_pad, block_d, 128)

    # ---- batch tiling: sublane-align, and give the "parallel" axis >= 2
    # tiles whenever the batch allows so both v7x TensorCores get work.
    b_pad = _round_up(B, 8)
    cap = min(block_b, b_pad // 2 if b_pad >= 16 else b_pad)
    cap = max(8, (cap // 8) * 8)
    tb = 8
    for t in range(cap, 7, -8):
        if b_pad % t == 0:
            tb = t
            break

    if b_pad != B or d_pad != D:
        # Only hit when B % 8 != 0 or D % 128 != 0 (tiny test shapes / odd
        # configs). Typical training shapes take the copy-free path above.
        real_f = jnp.pad(real_f, ((0, b_pad - B), (0, d_pad - D)))
        fake_f = jnp.pad(fake_f, ((0, b_pad - B), (0, d_pad - D)))
        alpha_f = jnp.pad(alpha_f, ((0, b_pad - B), (0, 0)))
        if d_pad != D:
            w1_p = jnp.pad(w1_p, ((0, d_pad - D), (0, 0)))

    grid = (b_pad // tb, d_pad // td)   # reduction (D) axis last

    out = pl.pallas_call(
        _grad_penalty_kernel,
        out_shape=jax.ShapeDtypeStruct((b_pad, 128), jnp.float32),
        grid_spec=pltpu.PrefetchScalarGridSpec(
            num_scalar_prefetch=0,
            grid=grid,
            in_specs=[
                pl.BlockSpec((tb, 1), lambda i, k: (i, 0)),        # alpha
                pl.BlockSpec((tb, td), lambda i, k: (i, k)),       # real tile
                pl.BlockSpec((tb, td), lambda i, k: (i, k)),       # fake tile
                pl.BlockSpec((td, HIDP), lambda i, k: (k, 0)),     # W1 tile
                pl.BlockSpec((HIDP, HIDP), lambda i, k: (0, 0)),   # gram_w
            ],
            out_specs=pl.BlockSpec((tb, 128), lambda i, k: (i, 0)),
            scratch_shapes=[pltpu.VMEM((tb, HIDP), jnp.float32)],
        ),
        compiler_params=pltpu.CompilerParams(
            dimension_semantics=("parallel", "arbitrary"),
            # ~11 MiB double-buffered footprint at tb=256 / td=2048 / f32;
            # 32 MiB scoped limit is safe on v5e/v6e (128 MiB) and v7x (64 MiB).
            vmem_limit_bytes=32 * 1024 * 1024,
        ),
    )(alpha_f, real_f, fake_f, w1_p, gram_w)

    # Tiny final reduction (mean over the real batch rows) + weight stay in
    # the wrapper so the batch grid axis remains purely "parallel".
    return jnp.mean(out[:B, 0]) * weight


if __name__ == "__main__":
    key = jax.random.PRNGKey(0)
    k1, k2, k3, k4, k5 = jax.random.split(key, 5)

    B, C, Hh, W = 2, 4, 16, 16       # NCHW, matching the PyTorch convention
    D = C * Hh * W                   # 1024 flattened features
    HID = 32                         # discriminator hidden width
    weight = 1.0

    real = jax.random.normal(k1, (B, C, Hh, W), jnp.float32)
    fake = jax.random.normal(k2, (B, C, Hh, W), jnp.float32)
    # torch.rand(B, 1, 1, 1) equivalent (uniform [0, 1)), done host-side.
    alpha = jax.random.uniform(k3, (B, 1, 1, 1), jnp.float32)

    # Deterministic discriminator parameters (synthetic, not a checkpoint).
    w1 = jax.random.normal(k4, (D, HID), jnp.float32) * 0.05
    w2 = jax.random.normal(k5, (1, HID), jnp.float32) * 0.05

    out = grad_penalty(real, fake, alpha, w1, w2, weight)
    out = jax.block_until_ready(out)

    # Pure-JAX autodiff reference for correctness.
    def disc(x_flat):
        return jnp.maximum(x_flat @ w1, 0.0) @ w2.T           # (B, 1)

    real_f = real.reshape(B, D)
    fake_f = fake.reshape(B, D)
    a = alpha.reshape(B, 1)
    lerp = a * real_f + (1.0 - a) * fake_f
    grads = jax.grad(lambda x: jnp.sum(disc(x)))(lerp)
    ref = jnp.mean((jnp.linalg.norm(grads, axis=1) - 1.0) ** 2) * weight

    assert jnp.allclose(out, ref, rtol=1e-4, atol=1e-6), (float(out), float(ref))
    print("KERNEL_OK")
</pallas_src>

<mosaic_0001>
module attributes {stable_mosaic.version = 11 : i64} {
  func.func @_grad_penalty_kernel(%arg0: i32, %arg1: i32, %arg2: memref<8x1xf32, #tpu.memory_space<vmem>>, %arg3: memref<8x1024xf32, #tpu.memory_space<vmem>>, %arg4: memref<8x1024xf32, #tpu.memory_space<vmem>>, %arg5: memref<1024x128xf32, #tpu.memory_space<vmem>>, %arg6: memref<128x128xf32, #tpu.memory_space<vmem>>, %arg7: memref<8x128xf32, #tpu.memory_space<vmem>>, %arg8: memref<8x128xf32, #tpu.memory_space<vmem>>) attributes {dimension_semantics = [#tpu.dimension_semantics<parallel>, #tpu.dimension_semantics<arbitrary>], iteration_bounds = array<i64: 1, 1>, scalar_prefetch = 0 : i64, scratch_operands = 1 : i64, tpu.core_type = #tpu.core_type<tc>, window_params = [{transform_indices = @transform_0, window_bounds = array<i64: 8, 1>}, {transform_indices = @transform_1, window_bounds = array<i64: 8, 1024>}, {transform_indices = @transform_2, window_bounds = array<i64: 8, 1024>}, {transform_indices = @transform_3, window_bounds = array<i64: 1024, 128>}, {pipeline_mode = #tpu.pipeline_mode<synchronous>, transform_indices = @transform_4, window_bounds = array<i64: 128, 128>}, {transform_indices = @transform_5, window_bounds = array<i64: 8, 128>}]} {
    %c0_i32 = arith.constant 0 : i32
    %0 = arith.cmpi eq, %arg1, %c0_i32 : i32
    %1 = arith.extui %0 : i1 to i32
    %c0_i32_0 = arith.constant 0 : i32
    %2 = arith.cmpi ne, %1, %c0_i32_0 : i32
    scf.if %2 {
      %cst_18 = arith.constant 0.000000e+00 : f32
      %23 = vector.broadcast %cst_18 : f32 to vector<8x128xf32>
      %c0_19 = arith.constant 0 : index
      %c0_20 = arith.constant 0 : index
      %24 = vector.load %arg8[%c0_19, %c0_20] : memref<8x128xf32, #tpu.memory_space<vmem>>, vector<8x128xf32>
      tpu.vector_store %arg8[%c0_19, %c0_20], %23 {strides = array<i32>} : memref<8x128xf32, #tpu.memory_space<vmem>>, vector<8x128xf32>,
    } else {
    }
    %c0 = arith.constant 0 : index
    %c0_1 = arith.constant 0 : index
    %3 = vector.load %arg2[%c0, %c0_1] : memref<8x1xf32, #tpu.memory_space<vmem>>, vector<8x1xf32>
    %c0_2 = arith.constant 0 : index
    %c0_3 = arith.constant 0 : index
    %4 = vector.load %arg3[%c0_2, %c0_3] : memref<8x1024xf32, #tpu.memory_space<vmem>>, vector<8x1024xf32>
    %c0_4 = arith.constant 0 : index
    %c0_5 = arith.constant 0 : index
    %5 = vector.load %arg5[%c0_4, %c0_5] : memref<1024x128xf32, #tpu.memory_space<vmem>>, vector<1024x128xf32>
    %cst = arith.constant dense<0.000000e+00> : vector<8x128xf32>
    %6 = tpu.matmul %4, %5, %cst {dimension_numbers = #tpu.dot_dimension_numbers<[1], [0], [0], [1], [0, 0, 1, 1], [], []>} : vector<8x1024xf32>, vector<1024x128xf32>, vector<8x128xf32> -> vector<8x128xf32>
    %c0_6 = arith.constant 0 : index
    %c0_7 = arith.constant 0 : index
    %7 = vector.load %arg4[%c0_6, %c0_7] : memref<8x1024xf32, #tpu.memory_space<vmem>>, vector<8x1024xf32>
    %c0_8 = arith.constant 0 : index
    %c0_9 = arith.constant 0 : index
    %8 = vector.load %arg5[%c0_8, %c0_9] : memref<1024x128xf32, #tpu.memory_space<vmem>>, vector<1024x128xf32>
    %cst_10 = arith.constant dense<0.000000e+00> : vector<8x128xf32>
    %9 = tpu.matmul %7, %8, %cst_10 {dimension_numbers = #tpu.dot_dimension_numbers<[1], [0], [0], [1], [0, 0, 1, 1], [], []>} : vector<8x1024xf32>, vector<1024x128xf32>, vector<8x128xf32> -> vector<8x128xf32>
    %c0_11 = arith.constant 0 : index
    %c0_12 = arith.constant 0 : index
    %10 = vector.load %arg8[%c0_11, %c0_12] : memref<8x128xf32, #tpu.memory_space<vmem>>, vector<8x128xf32>
    %11 = vector.broadcast %3 : vector<8x1xf32> to vector<8x128xf32>
    %12 = arith.mulf %11, %6 : vector<8x128xf32>
    %cst_13 = arith.constant 1.000000e+00 : f32
    %13 = vector.broadcast %cst_13 : f32 to vector<8x1xf32>
    %14 = arith.subf %13, %3 : vector<8x1xf32>
    %15 = vector.broadcast %14 : vector<8x1xf32> to vector<8x128xf32>
    %16 = arith.mulf %15, %9 : vector<8x128xf32>
    %17 = arith.addf %12, %16 : vector<8x128xf32>
    %18 = arith.addf %10, %17 : vector<8x128xf32>
    %c0_14 = arith.constant 0 : index
    %c0_15 = arith.constant 0 : index
    %19 = vector.load %arg8[%c0_14, %c0_15] : memref<8x128xf32, #tpu.memory_space<vmem>>, vector<8x128xf32>
    tpu.vector_store %arg8[%c0_14, %c0_15], %18 {strides = array<i32>} : memref<8x128xf32, #tpu.memory_space<vmem>>, vector<8x128xf32>,
    %c0_i32_16 = arith.constant 0 : i32
    %20 = arith.cmpi eq, %arg1, %c0_i32_16 : i32
    %21 = arith.extui %20 : i1 to i32
    %c0_i32_17 = arith.constant 0 : i32
    %22 = arith.cmpi ne, %21, %c0_i32_17 : i32
    scf.if %22 {
      %c0_18 = arith.constant 0 : index
      %c0_19 = arith.constant 0 : index
      %23 = vector.load %arg8[%c0_18, %c0_19] : memref<8x128xf32, #tpu.memory_space<vmem>>, vector<8x128xf32>
      %cst_20 = arith.constant 0.000000e+00 : f32
      %24 = vector.broadcast %cst_20 : f32 to vector<8x128xf32>
      %25 = arith.cmpf ogt, %23, %24 : vector<8x128xf32>
      %26 = arith.extui %25 : vector<8x128xi1> to vector<8x128xi32>
      %27 = arith.sitofp %26 : vector<8x128xi32> to vector<8x128xf32>
      %c0_21 = arith.constant 0 : index
      %c0_22 = arith.constant 0 : index
      %28 = vector.load %arg6[%c0_21, %c0_22] : memref<128x128xf32, #tpu.memory_space<vmem>>, vector<128x128xf32>
      %cst_23 = arith.constant dense<0.000000e+00> : vector<8x128xf32>
      %29 = tpu.matmul %27, %28, %cst_23 {dimension_numbers = #tpu.dot_dimension_numbers<[1], [0], [0], [1], [0, 0, 1, 1], [], []>} : vector<8x128xf32>, vector<128x128xf32>, vector<8x128xf32> -> vector<8x128xf32>
      %30 = arith.mulf %29, %27 : vector<8x128xf32>
      %cst_24 = arith.constant dense<0.000000e+00> : vector<8xf32>
      %31 = vector.multi_reduction <add>, %30, %cst_24 [1] : vector<8x128xf32> to vector<8xf32>
      %32 = vector.shape_cast %31 : vector<8xf32> to vector<8x1xf32>
      %33 = math.sqrt %32 : vector<8x1xf32>
      %cst_25 = arith.constant 1.000000e+00 : f32
      %34 = vector.broadcast %cst_25 : f32 to vector<8x1xf32>
      %35 = arith.subf %33, %34 : vector<8x1xf32>
      %36 = arith.mulf %35, %35 : vector<8x1xf32>
      %37 = vector.shape_cast %36 : vector<8x1xf32> to vector<8x1xf32>
      %38 = vector.broadcast %37 : vector<8x1xf32> to vector<8x128xf32>
      %c0_26 = arith.constant 0 : index
      %c0_27 = arith.constant 0 : index
      %39 = vector.load %arg7[%c0_26, %c0_27] : memref<8x128xf32, #tpu.memory_space<vmem>>, vector<8x128xf32>
      tpu.vector_store %arg7[%c0_26, %c0_27], %38 {strides = array<i32>} : memref<8x128xf32, #tpu.memory_space<vmem>>, vector<8x128xf32>,
    } else {
    }
    return
  }
  func.func @transform_0(%arg0: i32, %arg1: i32) -> (i32, i32) {
    %c0_i32 = arith.constant 0 : i32
    %c0_i32_0 = arith.constant 0 : i32
    return %arg0, %c0_i32 : i32, i32
  }
  func.func @transform_1(%arg0: i32, %arg1: i32) -> (i32, i32) {
    %c0_i32 = arith.constant 0 : i32
    return %arg0, %arg1 : i32, i32
  }
  func.func @transform_2(%arg0: i32, %arg1: i32) -> (i32, i32) {
    %c0_i32 = arith.constant 0 : i32
    return %arg0, %arg1 : i32, i32
  }
  func.func @transform_3(%arg0: i32, %arg1: i32) -> (i32, i32) {
    %c0_i32 = arith.constant 0 : i32
    %c0_i32_0 = arith.constant 0 : i32
    return %arg1, %c0_i32 : i32, i32
  }
  func.func @transform_4(%arg0: i32, %arg1: i32) -> (i32, i32) {
    %c0_i32 = arith.constant 0 : i32
    %c0_i32_0 = arith.constant 0 : i32
    %c0_i32_1 = arith.constant 0 : i32
    return %c0_i32, %c0_i32_0 : i32, i32
  }
  func.func @transform_5(%arg0: i32, %arg1: i32) -> (i32, i32) {
    %c0_i32 = arith.constant 0 : i32
    %c0_i32_0 = arith.constant 0 : i32
    return %arg0, %c0_i32 : i32, i32
  }
}

</mosaic_0001>

<bundles_post_ra>
// kernel: tpu_custom_call.1
= control target key start
LH: loop header
LB: loop body
LE: loop exit
PB: predicated region body
PF: predicated region fallthrough
CT: control target
= control target key end

     0   :  { %10 = vsyncpa [#allocation4], 0  ;;  %s2031_s0 = inlined_call_operand.vmem [shape: f32[8,1], index: 0, kind: input, shape index: {}]   ;;  %s2032_s1 = inlined_call_operand.hbm [shape: f32[8,1024], index: 1, kind: input, shape index: {}]   ;;  %s2033_s2 = inlined_call_operand.hbm [shape: f32[8,1024], index: 2, kind: input, shape index: {}]   ;;  %s2034_s3 = inlined_call_operand.hbm [shape: f32[1024,128], index: 3, kind: input, shape index: {}]   ;;  %s2035_s4 = inlined_call_operand.hbm [shape: f32[128,128], index: 4, kind: input, shape index: {}]   ;;  %s2036_s5 = inlined_call_operand.hbm [shape: f32[8,128], index: 5, kind: output, shape index: {}]  }
   0x1   :  { %11 = vsyncpa [#allocation7], 0 }
   0x2   :  { %12 = vsyncpa [#allocation10], 0 }
   0x3   :  { %13 = vsyncpa [#allocation5], 0  ;;  %s1670_s18 = smov [#allocation6]   ;;  %s1671_s20 = smov [#allocation3]  }
   0x4   :  { %s32_s19 = sshll.u32 %s1670_s18, 4  ;;  %s22_s21 = sshll.u32 %s1671_s20, 4  ;;  %s33_s19 = int_to_ptr.vmem [resolvable:$true] %s32_s19  ;;  %s23_s21 = int_to_ptr.vmem [resolvable:$true] %s22_s21 }
   0x5   :  { %s1552_s24 = scalar_lea.hbm %s2033_s2, 1024 }
   0x6   :  { %p1553_p0 = scmp.ne.s32.totalorder %s2033_s2, %s1552_s24  ;;  %p1556_p1 = scmp.lt.u32.totalorder %s1552_s24, %s2033_s2 }
   0x8   :  { %p1558_p2 = pnand %p1556_p1, %p1553_p0 }
   0xa   :  { %1561 = shalt.err (!%p1558_p2)
}
   0xb   :  { %s1562_s29 = scalar_lea.vmem %s33_s19, 1024  ;;  %p1567_p4 = scmp.lt.s32.totalorder %s33_s19, %s33_s19 }
   0xc   :  { %p1563_p3 = scmp.ne.s32.totalorder %s33_s19, %s1562_s29  ;;  %p1568_p5 = scmp.lt.s32.totalorder %s1562_s29, %s1562_s29 }
   0xe   :  { %p1569_p6 = por %p1568_p5, %p1567_p4 }
  0x10   :  { %p1570_p7 = pnand %p1569_p6, %p1563_p3 }
  0x12   :  { %1573 = shalt.err (!%p1570_p7)
}
  0x13   :  { %35 = dma.hbm_to_vmem [thread:$0]  %s2033_s2, 1024, %s33_s19, [#allocation7]  }
  0x14   :  { %s1574_s9 = scalar_lea.hbm %s2032_s1, 1024 }
  0x15   :  { %p1575_p8 = scmp.ne.s32.totalorder %s2032_s1, %s1574_s9  ;;  %p1578_p9 = scmp.lt.u32.totalorder %s1574_s9, %s2032_s1 }
  0x17   :  { %p1580_p10 = pnand %p1578_p9, %p1575_p8 }
  0x19   :  { %1583 = shalt.err (!%p1580_p10)
}
  0x1a   :  { %s1584_s14 = scalar_lea.vmem %s23_s21, 1024  ;;  %p1589_p12 = scmp.lt.s32.totalorder %s23_s21, %s23_s21 }
  0x1b   :  { %p1585_p11 = scmp.ne.s32.totalorder %s23_s21, %s1584_s14  ;;  %p1590_p13 = scmp.lt.s32.totalorder %s1584_s14, %s1584_s14 }
  0x1d   :  { %p1591_p0 = por %p1590_p13, %p1589_p12 }
  0x1f   :  { %p1592_p1 = pnand %p1591_p0, %p1585_p11 }
  0x21   :  { %1595 = shalt.err (!%p1592_p1)
}
  0x22   :  { %25 = dma.hbm_to_vmem [thread:$0]  %s2032_s1, 1024, %s23_s21, [#allocation4]  }
  0x23   :  { %s1672_s16 = smov [#allocation8]   ;;  %s1596_s20 = scalar_lea.hbm %s2034_s3, 16384 }
  0x24   :  { %s41_s17 = sshll.u32 %s1672_s16, 4  ;;  %p1597_p2 = scmp.ne.s32.totalorder %s2034_s3, %s1596_s20  ;;  %s42_s17 = int_to_ptr.vmem [resolvable:$true] %s41_s17 }
  0x25   :  { %p1600_p3 = scmp.lt.u32.totalorder %s1596_s20, %s2034_s3 }
  0x27   :  { %p1602_p4 = pnand %p1600_p3, %p1597_p2 }
  0x29   :  { %1605 = shalt.err (!%p1602_p4)
}
  0x2a   :  { %s1606_s26 = scalar_lea.vmem %s42_s17, 16384  ;;  %p1611_p6 = scmp.lt.s32.totalorder %s42_s17, %s42_s17 }
  0x2b   :  { %p1607_p5 = scmp.ne.s32.totalorder %s42_s17, %s1606_s26  ;;  %p1612_p7 = scmp.lt.s32.totalorder %s1606_s26, %s1606_s26 }
  0x2d   :  { %p1613_p8 = por %p1612_p7, %p1611_p6 }
  0x2f   :  { %p1614_p9 = pnand %p1613_p8, %p1607_p5 }
  0x31   :  { %1617 = shalt.err (!%p1614_p9)
}
  0x32   :  { %s1673_s1 = smov 128   ;;  %s1674_s21 = smov 8  }
  0x33   :  { %47 = dma.hbm_to_vmem [thread:$0]  %s2034_s3, 16384, %s42_s17, [#allocation7], %s1673_s1, %s1673_s1, %s1674_s21  }
  0x34   :  { %s1675_s29 = smov [#allocation9]   ;;  %s1618_s8 = scalar_lea.hbm %s2035_s4, 2048 }
  0x35   :  { %s53_s30 = sshll.u32 %s1675_s29, 4  ;;  %p1619_p10 = scmp.ne.s32.totalorder %s2035_s4, %s1618_s8  ;;  %s54_s30 = int_to_ptr.vmem [resolvable:$true] %s53_s30 }
  0x36   :  { %p1622_p11 = scmp.lt.u32.totalorder %s1618_s8, %s2035_s4 }
  0x38   :  { %p1624_p12 = pnand %p1622_p11, %p1619_p10 }
  0x3a   :  { %1627 = shalt.err (!%p1624_p12)
}
  0x3b   :  { %s1628_s13 = scalar_lea.vmem %s54_s30, 2048  ;;  %p1633_p0 = scmp.lt.s32.totalorder %s54_s30, %s54_s30 }
  0x3c   :  { %p1629_p13 = scmp.ne.s32.totalorder %s54_s30, %s1628_s13  ;;  %p1634_p1 = scmp.lt.s32.totalorder %s1628_s13, %s1628_s13 }
  0x3e   :  { %p1635_p2 = por %p1634_p1, %p1633_p0 }
  0x40   :  { %p1636_p3 = pnand %p1635_p2, %p1629_p13 }
  0x42   :  { %1639 = shalt.err (!%p1636_p3)
}
  0x43   :  { %59 = dma.hbm_to_vmem [thread:$0]  %s2035_s4, 2048, %s54_s30, [#allocation10], %s1673_s1, %s1673_s1, %s1674_s21  }
  0x44   :  { %1662 = dma.done.wait [#allocation4], 1024  }
  0x45   :  { %1663 = vsyncadd [#allocation4], 4294966272 }
  0x46   :  { %1664 = dma.done.wait [#allocation7], 17408  }
  0x47   :  { %1665 = vsyncadd [#allocation7], 4294949888 }
  0x48   :  { %1666 = dma.done.wait [#allocation10], 2048  }
  0x49   :  { %1667 = vsyncadd [#allocation10], 4294965248  ;;  %v102_v0 = vld [vmem:[#allocation8 + $0x80] sm:$0xff]  ;;  %v103_v1 = vld [vmem:[#allocation8 + $0x88] sm:$0xff]  ;;  %v1676_v25 = vmov 0   ;;  %vm1678_vm0 = vmmov 0  }
  0x4a   :  { %v134_v2 = vld [vmem:[#allocation8 + $0x180] sm:$0xff]  ;;  %v1760_v3 = vpack.c.bf16 %v103_v1, %v102_v0  ;;  %v135_v4 = vld [vmem:[#allocation8 + $0x188] sm:$0xff]  ;;  %v104_v11 = vld [vmem:[#allocation8 + $0x90] sm:$0xff]  ;;  %1549 = vset.pattern.permute.xlu0 %v1676_v25 }
  0x4b   :  { %v86_v5 = vld [vmem:[#allocation8] sm:$0xff]  ;;  %v87_v6 = vld [vmem:[#allocation8 + $0x8] sm:$0xff]  ;;  %v1762_v7 = vpack.c.bf16 %v135_v4, %v134_v2  ;;  %v105_v13 = vld [vmem:[#allocation8 + $0x98] sm:$0xff] }
  0x4c   :  { %v1764_v8 = vpack.c.bf16 %v87_v6, %v86_v5  ;;  %v118_v9 = vld [vmem:[#allocation8 + $0x100] sm:$0xff]  ;;  %v119_v10 = vld [vmem:[#allocation8 + $0x108] sm:$0xff]  ;;  %1258 = vmatprep.subr.bf16.mxu0 %v1760_v3  ;;  %v136_v14 = vld [vmem:[#allocation8 + $0x190] sm:$0xff]  ;;  %v1771_v16 = vpack.c.bf16 %v105_v13, %v104_v11 }
  0x4d   :  { %v1767_v12 = vpack.c.bf16 %v119_v10, %v118_v9  ;;  %v137_v15 = vld [vmem:[#allocation8 + $0x198] sm:$0xff]  ;;  %1290 = vmatprep.subr.bf16.mxu1 %v1762_v7  ;;  %v88_v18 = vld [vmem:[#allocation8 + $0x10] sm:$0xff]  ;;  %v106_v23 = vld [vmem:[#allocation8 + $0xa0] sm:$0xff] }
  0x4e   :  { %1260 = vmatpush3.bf16.msra.mxu0 %v1764_v8  ;;  %v1773_v17 = vpack.c.bf16 %v137_v15, %v136_v14  ;;  %v89_v19 = vld [vmem:[#allocation8 + $0x18] sm:$0xff]  ;;  %v120_v20 = vld [vmem:[#allocation8 + $0x110] sm:$0xff]  ;;  %v107_v24 = vld [vmem:[#allocation8 + $0xa8] sm:$0xff] }
  0x4f   :  { %1292 = vmatpush3.bf16.msra.mxu1 %v1767_v12  ;;  %v1776_v21 = vpack.c.bf16 %v89_v19, %v88_v18  ;;  %v121_v22 = vld [vmem:[#allocation8 + $0x118] sm:$0xff]  ;;  %1262 = vmatprep.subr.bf16.mxu0 %v1771_v16  ;;  %v1782_v27 = vpack.c.bf16 %v107_v24, %v106_v23  ;;  %v138_v28 = vld [vmem:[#allocation8 + $0x1a0] sm:$0xff]  ;;  %v139_v29 = vld [vmem:[#allocation8 + $0x1a8] sm:$0xff] }
  0x50   :  { %1294 = vmatprep.subr.bf16.mxu1 %v1773_v17  ;;  %v1780_v26 = vpack.c.bf16 %v121_v22, %v120_v20  ;;  %v90_v30 = vld [vmem:[#allocation8 + $0x20] sm:$0xff]  ;;  %v1784_v31 = vpack.c.bf16 %v139_v29, %v138_v28  ;;  %v91_v32 = vld [vmem:[#allocation8 + $0x28] sm:$0xff]  ;;  %v108_v36 = vld [vmem:[#allocation8 + $0xb0] sm:$0xff] }
  0x51   :  { %v122_v33 = vld [vmem:[#allocation8 + $0x120] sm:$0xff]  ;;  %v123_v34 = vld [vmem:[#allocation8 + $0x128] sm:$0xff]  ;;  %v1787_v35 = vpack.c.bf16 %v91_v32, %v90_v30  ;;  %v109_v37 = vld [vmem:[#allocation8 + $0xb8] sm:$0xff] }
  0x52   :  { %1264 = vmatpush3.bf16.msra.mxu0 %v1776_v21  ;;  %v140_v38 = vld [vmem:[#allocation8 + $0x1b0] sm:$0xff]  ;;  %v1791_v39 = vpack.c.bf16 %v123_v34, %v122_v33  ;;  %v1793_v40 = vpack.c.bf16 %v109_v37, %v108_v36  ;;  %v141_v41 = vld [vmem:[#allocation8 + $0x1b8] sm:$0xff]  ;;  %v110_v47 = vld [vmem:[#allocation8 + $0xc0] sm:$0xff] }
  0x53   :  { %1296 = vmatpush3.bf16.msra.mxu1 %v1780_v26  ;;  %1266 = vmatprep.subr.bf16.mxu0 %v1782_v27  ;;  %v92_v42 = vld [vmem:[#allocation8 + $0x30] sm:$0xff]  ;;  %v93_v43 = vld [vmem:[#allocation8 + $0x38] sm:$0xff]  ;;  %v1796_v44 = vpack.c.bf16 %v141_v41, %v140_v38  ;;  %v111_v48 = vld [vmem:[#allocation8 + $0xc8] sm:$0xff] }
  0x54   :  { %1298 = vmatprep.subr.bf16.mxu1 %v1784_v31  ;;  %v124_v45 = vld [vmem:[#allocation8 + $0x130] sm:$0xff]  ;;  %v125_v46 = vld [vmem:[#allocation8 + $0x138] sm:$0xff]  ;;  %v142_v49 = vld [vmem:[#allocation8 + $0x1c0] sm:$0xff]  ;;  %v1799_v51 = vpack.c.bf16 %v93_v43, %v92_v42  ;;  %v1805_v53 = vpack.c.bf16 %v111_v48, %v110_v47 }
  0x55   :  { %v143_v50 = vld [vmem:[#allocation8 + $0x1c8] sm:$0xff]  ;;  %v1803_v52 = vpack.c.bf16 %v125_v46, %v124_v45  ;;  %v94_v54 = vld [vmem:[#allocation8 + $0x40] sm:$0xff]  ;;  %v112_v59 = vld [vmem:[#allocation8 + $0xd0] sm:$0xff] }
  0x56   :  { %1268 = vmatpush3.bf16.msra.mxu0 %v1787_v35  ;;  %v95_v55 = vld [vmem:[#allocation8 + $0x48] sm:$0xff]  ;;  %v126_v56 = vld [vmem:[#allocation8 + $0x140] sm:$0xff]  ;;  %v1808_v57 = vpack.c.bf16 %v143_v50, %v142_v49  ;;  %v113_v60 = vld [vmem:[#allocation8 + $0xd8] sm:$0xff] }
  0x57   :  { %1300 = vmatpush3.bf16.msra.mxu1 %v1791_v39  ;;  %1270 = vmatprep.subr.bf16.mxu0 %v1793_v40  ;;  %v127_v58 = vld [vmem:[#allocation8 + $0x148] sm:$0xff]  ;;  %v144_v61 = vld [vmem:[#allocation8 + $0x1d0] sm:$0xff]  ;;  %v145_v62 = vld [vmem:[#allocation8 + $0x1d8] sm:$0xff]  ;;  %v1811_v63 = vpack.c.bf16 %v95_v55, %v94_v54  ;;  %v1817_v1 = vpack.c.bf16 %v113_v60, %v112_v59 }
  0x58   :  { %1302 = vmatprep.subr.bf16.mxu1 %v1796_v44  ;;  %v1815_v0 = vpack.c.bf16 %v127_v58, %v126_v56  ;;  %v96_v2 = vld [vmem:[#allocation8 + $0x50] sm:$0xff]  ;;  %v97_v4 = vld [vmem:[#allocation8 + $0x58] sm:$0xff]  ;;  %v1820_v6 = vpack.c.bf16 %v145_v62, %v144_v61  ;;  %v114_v10 = vld [vmem:[#allocation8 + $0xe0] sm:$0xff] }
  0x59   :  { %v128_v5 = vld [vmem:[#allocation8 + $0x150] sm:$0xff]  ;;  %v129_v9 = vld [vmem:[#allocation8 + $0x158] sm:$0xff]  ;;  %v115_v11 = vld [vmem:[#allocation8 + $0xe8] sm:$0xff]  ;;  %v1823_v15 = vpack.c.bf16 %v97_v4, %v96_v2 }
  0x5a   :  { %1272 = vmatpush3.bf16.msra.mxu0 %v1799_v51  ;;  %v146_v13 = vld [vmem:[#allocation8 + $0x1e0] sm:$0xff]  ;;  %v147_v14 = vld [vmem:[#allocation8 + $0x1e8] sm:$0xff]  ;;  %v1827_v20 = vpack.c.bf16 %v129_v9, %v128_v5  ;;  %v1829_v22 = vpack.c.bf16 %v115_v11, %v114_v10  ;;  %v81_v25 = vld [vmem:[#allocation3 + $0x18] sm:$0xff] }
  0x5b   :  { %1304 = vmatpush3.bf16.msra.mxu1 %v1803_v52  ;;  %1274 = vmatprep.subr.bf16.mxu0 %v1805_v53  ;;  %v98_v18 = vld [vmem:[#allocation8 + $0x60] sm:$0xff]  ;;  %v99_v19 = vld [vmem:[#allocation8 + $0x68] sm:$0xff]  ;;  %v1832_v28 = vpack.c.bf16 %v147_v14, %v146_v13  ;;  %v116_v30 = vld [vmem:[#allocation8 + $0xf0] sm:$0xff] }
  0x5c   :  { %1306 = vmatprep.subr.bf16.mxu1 %v1808_v57  ;;  %v130_v23 = vld [vmem:[#allocation8 + $0x160] sm:$0xff]  ;;  %v79_v24 = vld [vmem:[#allocation3 + $0x8] sm:$0xff]  ;;  %v117_v32 = vld [vmem:[#allocation8 + $0xf8] sm:$0xff]  ;;  %348 = vmatprep.mubr.f32.mxu1 %v81_v25  ;;  %v1835_v36 = vpack.c.bf16 %v99_v19, %v98_v18 }
  0x5d   :  { %v131_v29 = vld [vmem:[#allocation8 + $0x168] sm:$0xff]  ;;  %278 = vmatprep.mubr.f32.mxu0 %v79_v24  ;;  %v148_v33 = vld [vmem:[#allocation8 + $0x1f0] sm:$0xff]  ;;  %v149_v34 = vld [vmem:[#allocation8 + $0x1f8] sm:$0xff]  ;;  %v1841_v38 = vpack.c.bf16 %v117_v32, %v116_v30 }
  0x5e   :  { %1276 = vmatpush3.bf16.msra.mxu0 %v1811_v63  ;;  %v1839_v37 = vpack.c.bf16 %v131_v29, %v130_v23  ;;  %v100_v41 = vld [vmem:[#allocation8 + $0x70] sm:$0xff]  ;;  %v101_v42 = vld [vmem:[#allocation8 + $0x78] sm:$0xff]  ;;  %v1844_v45 = vpack.c.bf16 %v149_v34, %v148_v33  ;;  %v166_v47 = vld [vmem:[#allocation8 + $0x280] sm:$0xff] }
  0x5f   :  { %1308 = vmatpush3.bf16.msra.mxu1 %v1815_v0  ;;  %1278 = vmatprep.subr.bf16.mxu0 %v1817_v1  ;;  %v132_v43 = vld [vmem:[#allocation8 + $0x170] sm:$0xff]  ;;  %v133_v46 = vld [vmem:[#allocation8 + $0x178] sm:$0xff]  ;;  %v167_v48 = vld [vmem:[#allocation8 + $0x288] sm:$0xff]  ;;  %v1847_v54 = vpack.c.bf16 %v101_v42, %v100_v41 }
  0x60   :  { %1310 = vmatprep.subr.bf16.mxu1 %v1820_v6  ;;  %v198_v49 = vld [vmem:[#allocation8 + $0x380] sm:$0xff]  ;;  %v199_v50 = vld [vmem:[#allocation8 + $0x388] sm:$0xff]  ;;  %v1851_v55 = vpack.c.bf16 %v133_v46, %v132_v43  ;;  %v1853_v56 = vpack.c.bf16 %v167_v48, %v166_v47  ;;  %v168_v2 = vld [vmem:[#allocation8 + $0x290] sm:$0xff] }
  0x61   :  { %v150_v58 = vld [vmem:[#allocation8 + $0x200] sm:$0xff]  ;;  %v151_v59 = vld [vmem:[#allocation8 + $0x208] sm:$0xff]  ;;  %v1856_v61 = vpack.c.bf16 %v199_v50, %v198_v49  ;;  %v169_v4 = vld [vmem:[#allocation8 + $0x298] sm:$0xff] }
  0x62   :  { %1280 = vmatpush3.bf16.msra.mxu0 %v1823_v15  ;;  %v182_v60 = vld [vmem:[#allocation8 + $0x300] sm:$0xff]  ;;  %v183_v62 = vld [vmem:[#allocation8 + $0x308] sm:$0xff]  ;;  %v200_v5 = vld [vmem:[#allocation8 + $0x390] sm:$0xff]  ;;  %v1859_v13 = vpack.c.bf16 %v151_v59, %v150_v58  ;;  %v1865_v18 = vpack.c.bf16 %v169_v4, %v168_v2 }
  0x63   :  { %1312 = vmatpush3.bf16.msra.mxu1 %v1827_v20  ;;  %1282 = vmatprep.subr.bf16.mxu0 %v1829_v22  ;;  %v201_v9 = vld [vmem:[#allocation8 + $0x398] sm:$0xff]  ;;  %v78_v10 = vld [vmem:[#allocation3] sm:$0xff]  ;;  %v80_v11 = vld [vmem:[#allocation3 + $0x10] sm:$0xff]  ;;  %v1863_v14 = vpack.c.bf16 %v183_v62, %v182_v60 }
  0x64   :  { %1314 = vmatprep.subr.bf16.mxu1 %v1832_v28  ;;  %v152_v19 = vld [vmem:[#allocation8 + $0x210] sm:$0xff]  ;;  %v153_v23 = vld [vmem:[#allocation8 + $0x218] sm:$0xff]  ;;  %v1868_v25 = vpack.c.bf16 %v201_v9, %v200_v5  ;;  %v170_v30 = vld [vmem:[#allocation8 + $0x2a0] sm:$0xff] }
  0x65   :  { %v184_v24 = vld [vmem:[#allocation8 + $0x310] sm:$0xff]  ;;  %v185_v29 = vld [vmem:[#allocation8 + $0x318] sm:$0xff]  ;;  %v171_v32 = vld [vmem:[#allocation8 + $0x2a8] sm:$0xff]  ;;  %v1871_v41 = vpack.c.bf16 %v153_v23, %v152_v19 }
  0x66   :  { %1284 = vmatpush3.bf16.msra.mxu0 %v1835_v36  ;;  %v202_v33 = vld [vmem:[#allocation8 + $0x3a0] sm:$0xff]  ;;  %v203_v34 = vld [vmem:[#allocation8 + $0x3a8] sm:$0xff]  ;;  %v1875_v42 = vpack.c.bf16 %v185_v29, %v184_v24  ;;  %v1877_v43 = vpack.c.bf16 %v171_v32, %v170_v30  ;;  %v172_v58 = vld [vmem:[#allocation8 + $0x2b0] sm:$0xff] }
  0x67   :  { %1316 = vmatpush3.bf16.msra.mxu1 %v1839_v37  ;;  %1286 = vmatprep.subr.bf16.mxu0 %v1841_v38  ;;  %v154_v46 = vld [vmem:[#allocation8 + $0x220] sm:$0xff]  ;;  %v155_v47 = vld [vmem:[#allocation8 + $0x228] sm:$0xff]  ;;  %v1880_v49 = vpack.c.bf16 %v203_v34, %v202_v33  ;;  %v173_v59 = vld [vmem:[#allocation8 + $0x2b8] sm:$0xff] }
  0x68   :  { %1318 = vmatprep.subr.bf16.mxu1 %v1844_v45  ;;  %v186_v48 = vld [vmem:[#allocation8 + $0x320] sm:$0xff]  ;;  %v187_v50 = vld [vmem:[#allocation8 + $0x328] sm:$0xff]  ;;  %v204_v60 = vld [vmem:[#allocation8 + $0x3b0] sm:$0xff]  ;;  %v1883_v2 = vpack.c.bf16 %v155_v47, %v154_v46  ;;  %v1889_v5 = vpack.c.bf16 %v173_v59, %v172_v58 }
  0x69   :  { %2047 = vst [vmem:[#allocation16_spill] sm:$0xff] %v1880_v49  ;;  %v205_v62 = vld [vmem:[#allocation8 + $0x3b8] sm:$0xff]  ;;  %v1887_v4 = vpack.c.bf16 %v187_v50, %v186_v48  ;;  %v156_v9 = vld [vmem:[#allocation8 + $0x230] sm:$0xff]  ;;  %v174_v24 = vld [vmem:[#allocation8 + $0x2c0] sm:$0xff] }
  0x6a   :  { %1288 = vmatpush3.bf16.msra.mxu0 %v1847_v54  ;;  %2048 = vst [vmem:[#allocation17_spill] sm:$0xff] %v1883_v2  ;;  %2049 = vst [vmem:[#allocation18_spill] sm:$0xff] %v1889_v5  ;;  %v1892_v19 = vpack.c.bf16 %v205_v62, %v204_v60  ;;  %v189_v23 = vld [vmem:[#allocation8 + $0x338] sm:$0xff]  ;;  %v175_v29 = vld [vmem:[#allocation8 + $0x2c8] sm:$0xff] }
  0x6b   :  { %1320 = vmatpush3.bf16.msra.mxu1 %v1851_v55  ;;  %1322 = vmatprep.subr.bf16.mxu0 %v1853_v56  ;;  %v206_v30 = vld [vmem:[#allocation8 + $0x3c0] sm:$0xff]  ;;  %v207_v32 = vld [vmem:[#allocation8 + $0x3c8] sm:$0xff]  ;;  %v85_v46 = vld [vmem:[#allocation3 + $0x38] sm:$0xff]  ;;  %v1901_v48 = vpack.c.bf16 %v175_v29, %v174_v24 }
  0x6c   :  { %1354 = vmatprep.subr.bf16.mxu1 %v1856_v61  ;;  %2050 = vst [vmem:[#allocation19_spill] sm:$0xff] %v1892_v19  ;;  %v83_v34 = vld [vmem:[#allocation3 + $0x28] sm:$0xff]  ;;  %v158_v50 = vld [vmem:[#allocation8 + $0x240] sm:$0xff]  ;;  %v1904_v60 = vpack.c.bf16 %v207_v32, %v206_v30  ;;  %v160_v30 = vld [vmem:[#allocation8 + $0x250] sm:$0xff] }
  0x6d   :  { %279 = vmatmul.mubr.f32.vlgmr.msra.gmra.mrb[0].mxu0 %v78_v10  ;;  %v157_v10 = vld [vmem:[#allocation8 + $0x238] sm:$0xff]  ;;  %2053 = vst [vmem:[#allocation22_spill] sm:$0xff] %v1901_v48  ;;  %v159_v58 = vld [vmem:[#allocation8 + $0x248] sm:$0xff]  ;;  %v190_v59 = vld [vmem:[#allocation8 + $0x340] sm:$0xff] }
  0x6e   :  { %349 = vmatmul.mubr.f32.vlgmr.msra.gmra.mrb[0].mxu1 %v80_v11  ;;  %1324 = vmatpush3.bf16.msra.mxu0 %v1859_v13  ;;  %v188_v11 = vld [vmem:[#allocation8 + $0x330] sm:$0xff]  ;;  %v1895_v33 = vpack.c.bf16 %v157_v10, %v156_v9  ;;  %2054 = vst [vmem:[#allocation23_spill] sm:$0xff] %v1904_v60  ;;  %v191_v62 = vld [vmem:[#allocation8 + $0x348] sm:$0xff]  ;;  %v177_v10 = vld [vmem:[#allocation8 + $0x2d8] sm:$0xff] }
  0x6f   :  { %1356 = vmatpush3.bf16.msra.mxu1 %v1863_v14  ;;  %1326 = vmatprep.subr.bf16.mxu0 %v1865_v18  ;;  %v1899_v47 = vpack.c.bf16 %v189_v23, %v188_v11  ;;  %v176_v9 = vld [vmem:[#allocation8 + $0x2d0] sm:$0xff]  ;;  %v1907_v11 = vpack.c.bf16 %v159_v58, %v158_v50  ;;  %v77_v23 = vld [vmem:[%s2031_s0] sm:$0xff]  ;;  %v1914_v24 = vpack.c.bf16 %v191_v62, %v190_v59  ;;  %v161_v32 = vld [vmem:[#allocation8 + $0x258] sm:$0xff]  ;;  %s1681_s0 = smov [#allocation11]  }
  0x70   :  { %1358 = vmatprep.subr.bf16.mxu1 %v1868_v25  ;;  %2051 = vst [vmem:[#allocation20_spill] sm:$0xff] %v1895_v33  ;;  %418 = vmatprep.mubr.f32.mxu0 %v83_v34  ;;  %v1916_v29 = vpack.c.bf16 %v177_v10, %v176_v9  ;;  %v192_v34 = vld [vmem:[#allocation8 + $0x350] sm:$0xff]  ;;  %v193_v50 = vld [vmem:[#allocation8 + $0x358] sm:$0xff]  ;;  %v178_v58 = vld [vmem:[#allocation8 + $0x2e0] sm:$0xff]  ;;  %v1922_v59 = vpack.c.bf16 %v161_v32, %v160_v30  ;;  %s911_s15 = sshll.u32 %s1681_s0, 4  ;;  %s912_s15 = int_to_ptr.vmem [resolvable:$true] %s911_s15 }
  0x71   :  { %2052 = vst [vmem:[#allocation21_spill] sm:$0xff] %v1899_v47  ;;  %488 = vmatprep.mubr.f32.mxu1 %v85_v46  ;;  %2055 = vst [vmem:[#allocation24_spill] sm:$0xff] %v1907_v11  ;;  %785 = vperm.xlu0 %1549, %v77_v23   ;;  %v1926_v62 = vpack.c.bf16 %v193_v50, %v192_v34  ;;  %v194_v10 = vld [vmem:[#allocation8 + $0x360] sm:$0xff]  ;;  %v212_v30 = vld [vmem:[#allocation8 + $0x3f0] sm:$0xff]  ;;  %s1640_s16 = scalar_lea.vmem %s912_s15, 128  ;;  %p1645_p5 = scmp.lt.s32.totalorder %s912_s15, %s912_s15 }
  0x72   :  { %1328 = vmatpush3.bf16.msra.mxu0 %v1871_v41  ;;  %2056 = vst [vmem:[#allocation25_spill] sm:$0xff] %v1916_v29  ;;  %v213_v32 = vld [vmem:[#allocation8 + $0x3f8] sm:$0xff]  ;;  %p1641_p4 = scmp.ne.s32.totalorder %s912_s15, %s1640_s16  ;;  %p1646_p6 = scmp.lt.s32.totalorder %s1640_s16, %s1640_s16 }
  0x73   :  { %1360 = vmatpush3.bf16.msra.mxu1 %v1875_v42  ;;  %1330 = vmatprep.subr.bf16.mxu0 %v1877_v43  ;;  %v1943_v50 = vpack.c.bf16 %v213_v32, %v212_v30 }
  0x74   :  { %1362 = vmatprep.subr.bf16.mxu1 %v1880_v49  ;;  %v209_v49 = vld [vmem:[#allocation8 + $0x3d8] sm:$0xff]  ;;  %p1647_p7 = por %p1646_p6, %p1645_p5 }
  0x76   :  { %1332 = vmatpush3.bf16.msra.mxu0 %v1883_v2  ;;  %v208_v2 = vld [vmem:[#allocation8 + $0x3d0] sm:$0xff]  ;;  %p1648_p8 = pnand %p1647_p7, %p1641_p4 }
  0x77   :  { %1364 = vmatpush3.bf16.msra.mxu1 %v1887_v4  ;;  %1334 = vmatprep.subr.bf16.mxu0 %v1889_v5  ;;  %v1919_v46 = vpack.c.bf16 %v209_v49, %v208_v2  ;;  %v210_v5 = vld [vmem:[#allocation8 + $0x3e0] sm:$0xff]  ;;  %v163_v2 = vld [vmem:[#allocation8 + $0x268] sm:$0xff] }
  0x78   :  { %1366 = vmatprep.subr.bf16.mxu1 %v1892_v19  ;;  %v789_v19 = vsub.f32 1.0, %v77_v23  ;;  %v162_v49 = vld [vmem:[#allocation8 + $0x260] sm:$0xff] }
  0x7a   :  { %1336 = vmatpush3.bf16.msra.mxu0 %v1895_v33  ;;  %v179_v33 = vld [vmem:[#allocation8 + $0x2e8] sm:$0xff]  ;;  %792 = vperm.xlu0 %1549, %v789_v19   ;;  %v196_v19 = vld [vmem:[#allocation8 + $0x370] sm:$0xff] }
  0x7b   :  { %1368 = vmatpush3.bf16.msra.mxu1 %v1899_v47  ;;  %1338 = vmatprep.subr.bf16.mxu0 %v1901_v48  ;;  %v211_v47 = vld [vmem:[#allocation8 + $0x3e8] sm:$0xff]  ;;  %v1928_v9 = vpack.c.bf16 %v179_v33, %v178_v58  ;;  %v180_v48 = vld [vmem:[#allocation8 + $0x2f0] sm:$0xff]  ;;  %v197_v58 = vld [vmem:[#allocation8 + $0x378] sm:$0xff] }
  0x7c   :  { %1370 = vmatprep.subr.bf16.mxu1 %v1904_v60  ;;  %v1931_v23 = vpack.c.bf16 %v211_v47, %v210_v5  ;;  %v195_v60 = vld [vmem:[#allocation8 + $0x368] sm:$0xff]  ;;  %v164_v5 = vld [vmem:[#allocation8 + $0x270] sm:$0xff]  ;;  %v165_v47 = vld [vmem:[#allocation8 + $0x278] sm:$0xff] }
  0x7d   :  { %v1938_v33 = vpack.c.bf16 %v195_v60, %v194_v10  ;;  %v1950_v60 = vpack.c.bf16 %v197_v58, %v196_v19  ;;  %v497_v10 = vld [vmem:[#allocation6 + $0x18] sm:$0xff] }
  0x7e   :  { %1340 = vmatpush3.bf16.msra.mxu0 %v1907_v11  ;;  %v181_v11 = vld [vmem:[#allocation8 + $0x2f8] sm:$0xff] }
  0x7f   :  { %1372 = vmatpush3.bf16.msra.mxu1 %v1914_v24  ;;  %1342 = vmatprep.subr.bf16.mxu0 %v1916_v29  ;;  %v1934_v29 = vpack.c.bf16 %v163_v2, %v162_v49  ;;  %v1940_v34 = vpack.c.bf16 %v181_v11, %v180_v48  ;;  %v1946_v49 = vpack.c.bf16 %v165_v47, %v164_v5  ;;  %v82_v48 = vld [vmem:[#allocation3 + $0x20] sm:$0xff]  ;;  %v84_v11 = vld [vmem:[#allocation3 + $0x30] sm:$0xff]  ;;  %v495_v2 = vld [vmem:[#allocation6 + $0x8] sm:$0xff] }
  0x80   :  { %1374 = vmatprep.subr.bf16.mxu1 %v1919_v46 }
  0x82   :  { %1344 = vmatpush3.bf16.msra.mxu0 %v1922_v59 }
  0x83   :  { %1376 = vmatpush3.bf16.msra.mxu1 %v1926_v62  ;;  %1346 = vmatprep.subr.bf16.mxu0 %v1928_v9 }
  0x84   :  { %1378 = vmatprep.subr.bf16.mxu1 %v1931_v23 }
  0x86   :  { %1348 = vmatpush3.bf16.msra.mxu0 %v1934_v29 }
  0x87   :  { %1380 = vmatpush3.bf16.msra.mxu1 %v1938_v33  ;;  %1350 = vmatprep.subr.bf16.mxu0 %v1940_v34 }
  0x88   :  { %1382 = vmatprep.subr.bf16.mxu1 %v1943_v50 }
  0x8a   :  { %1352 = vmatpush3.bf16.msra.mxu0 %v1946_v49 }
  0x8b   :  { %1384 = vmatpush3.bf16.msra.mxu1 %v1950_v60  ;;  %1386 = vmatprep.subr.bf16.mxu0 %v1760_v3  ;;  %v494_v3 = vld [vmem:[#allocation6] sm:$0xff] }
  0x8c   :  { %1418 = vmatprep.subr.bf16.mxu1 %v1762_v7  ;;  %v496_v7 = vld [vmem:[#allocation6 + $0x10] sm:$0xff] }
  0x8d   :  { %419 = vmatmul.mubr.f32.vlgmr.msra.gmra.mrb[2].mxu0 %v82_v48 }
  0x8e   :  { %489 = vmatmul.mubr.f32.vlgmr.msra.gmra.mrb[2].mxu1 %v84_v11  ;;  %1388 = vmatpush3.bf16.msra.mxu0 %v1764_v8  ;;  %v499_v8 = vld [vmem:[#allocation6 + $0x28] sm:$0xff] }
  0x8f   :  { %1420 = vmatpush3.bf16.msra.mxu1 %v1767_v12  ;;  %1390 = vmatprep.subr.bf16.mxu0 %v1771_v16  ;;  %v501_v12 = vld [vmem:[#allocation6 + $0x38] sm:$0xff]  ;;  %v2057_v16 = vld [vmem:[#allocation16_spill] sm:$0xff] }
  0x90   :  { %1422 = vmatprep.subr.bf16.mxu1 %v1773_v17  ;;  %566 = vmatprep.mubr.f32.mxu0 %v495_v2  ;;  %v2058_v17 = vld [vmem:[#allocation17_spill] sm:$0xff] }
  0x91   :  { %636 = vmatprep.mubr.f32.mxu1 %v497_v10 }
  0x92   :  { %1392 = vmatpush3.bf16.msra.mxu0 %v1776_v21  ;;  %v2059_v21 = vld [vmem:[#allocation18_spill] sm:$0xff] }
  0x93   :  { %1424 = vmatpush3.bf16.msra.mxu1 %v1780_v26  ;;  %1394 = vmatprep.subr.bf16.mxu0 %v1782_v27  ;;  %v2060_v26 = vld [vmem:[#allocation19_spill] sm:$0xff]  ;;  %v2061_v27 = vld [vmem:[#allocation20_spill] sm:$0xff] }
  0x94   :  { %1426 = vmatprep.subr.bf16.mxu1 %v1784_v31  ;;  %v2062_v31 = vld [vmem:[#allocation21_spill] sm:$0xff] }
  0x96   :  { %1396 = vmatpush3.bf16.msra.mxu0 %v1787_v35  ;;  %v2063_v35 = vld [vmem:[#allocation22_spill] sm:$0xff] }
  0x97   :  { %1428 = vmatpush3.bf16.msra.mxu1 %v1791_v39  ;;  %1398 = vmatprep.subr.bf16.mxu0 %v1793_v40  ;;  %v2064_v39 = vld [vmem:[#allocation23_spill] sm:$0xff]  ;;  %v2065_v40 = vld [vmem:[#allocation24_spill] sm:$0xff] }
  0x98   :  { %1430 = vmatprep.subr.bf16.mxu1 %v1796_v44  ;;  %v2066_v44 = vld [vmem:[#allocation25_spill] sm:$0xff] }
  0x9a   :  { %1400 = vmatpush3.bf16.msra.mxu0 %v1799_v51  ;;  %v498_v51 = vld [vmem:[#allocation6 + $0x20] sm:$0xff] }
  0x9b   :  { %1432 = vmatpush3.bf16.msra.mxu1 %v1803_v52  ;;  %1402 = vmatprep.subr.bf16.mxu0 %v1805_v53  ;;  %v500_v52 = vld [vmem:[#allocation6 + $0x30] sm:$0xff]  ;;  %v806_v53 = vld [vmem:[#allocation9] sm:$0xff] }
  0x9c   :  { %1434 = vmatprep.subr.bf16.mxu1 %v1808_v57  ;;  %v807_v57 = vld [vmem:[#allocation9 + $0x8] sm:$0xff] }
  0x9e   :  { %1404 = vmatpush3.bf16.msra.mxu0 %v1811_v63  ;;  %v808_v63 = vld [vmem:[#allocation9 + $0x10] sm:$0xff] }
  0x9f   :  { %1436 = vmatpush3.bf16.msra.mxu1 %v1815_v0  ;;  %1406 = vmatprep.subr.bf16.mxu0 %v1817_v1  ;;  %v1677_v0 = vmov 0.0|0.0   ;;  %v1514_v1 = vpack.c.bf16 %v807_v57, %v806_v53 }
  0xa0   :  { %1438 = vmatprep.subr.bf16.mxu1 %v1820_v6  ;;  %v809_v6 = vld [vmem:[#allocation9 + $0x18] sm:$0xff] }
  0xa2   :  { %1408 = vmatpush3.bf16.msra.mxu0 %v1823_v15  ;;  %v1517_v15 = vpack.c.bf16 %v809_v6, %v808_v63 }
  0xa3   :  { %1440 = vmatpush3.bf16.msra.mxu1 %v1827_v20  ;;  %1410 = vmatprep.subr.bf16.mxu0 %v1829_v22  ;;  %v810_v20 = vld [vmem:[#allocation9 + $0x20] sm:$0xff]  ;;  %v811_v22 = vld [vmem:[#allocation9 + $0x28] sm:$0xff] }
  0xa4   :  { %1442 = vmatprep.subr.bf16.mxu1 %v1832_v28  ;;  %v1520_v28 = vpack.c.bf16 %v811_v22, %v810_v20 }
  0xa6   :  { %1412 = vmatpush3.bf16.msra.mxu0 %v1835_v36  ;;  %v812_v36 = vld [vmem:[#allocation9 + $0x30] sm:$0xff] }
  0xa7   :  { %1444 = vmatpush3.bf16.msra.mxu1 %v1839_v37  ;;  %1414 = vmatprep.subr.bf16.mxu0 %v1841_v38  ;;  %v813_v37 = vld [vmem:[#allocation9 + $0x38] sm:$0xff] }
  0xa8   :  { %1446 = vmatprep.subr.bf16.mxu1 %v1844_v45  ;;  %v1523_v38 = vpack.c.bf16 %v813_v37, %v812_v36  ;;  %v814_v45 = vld [vmem:[#allocation9 + $0x40] sm:$0xff] }
  0xaa   :  { %1416 = vmatpush3.bf16.msra.mxu0 %v1847_v54  ;;  %v815_v54 = vld [vmem:[#allocation9 + $0x48] sm:$0xff] }
  0xab   :  { %1448 = vmatpush3.bf16.msra.mxu1 %v1851_v55  ;;  %1450 = vmatprep.subr.bf16.mxu0 %v1853_v56  ;;  %v1526_v55 = vpack.c.bf16 %v815_v54, %v814_v45  ;;  %v816_v56 = vld [vmem:[#allocation9 + $0x50] sm:$0xff] }
  0xac   :  { %1482 = vmatprep.subr.bf16.mxu1 %v1856_v61  ;;  %v817_v61 = vld [vmem:[#allocation9 + $0x58] sm:$0xff] }
  0xad   :  { %567 = vmatmul.mubr.f32.vlgmr.msra.gmra.mrb[4].mxu0 %v494_v3 }
  0xae   :  { %637 = vmatmul.mubr.f32.vlgmr.msra.gmra.mrb[4].mxu1 %v496_v7  ;;  %1452 = vmatpush3.bf16.msra.mxu0 %v1859_v13  ;;  %v1529_v13 = vpack.c.bf16 %v817_v61, %v816_v56 }
  0xaf   :  { %1484 = vmatpush3.bf16.msra.mxu1 %v1863_v14  ;;  %1454 = vmatprep.subr.bf16.mxu0 %v1865_v18  ;;  %v818_v14 = vld [vmem:[#allocation9 + $0x60] sm:$0xff]  ;;  %v819_v18 = vld [vmem:[#allocation9 + $0x68] sm:$0xff] }
  0xb0   :  { %1486 = vmatprep.subr.bf16.mxu1 %v1868_v25  ;;  %706 = vmatprep.mubr.f32.mxu0 %v499_v8  ;;  %v1532_v25 = vpack.c.bf16 %v819_v18, %v818_v14 }
  0xb1   :  { %776 = vmatprep.mubr.f32.mxu1 %v501_v12 }
  0xb2   :  { %1456 = vmatpush3.bf16.msra.mxu0 %v1871_v41  ;;  %v820_v41 = vld [vmem:[#allocation9 + $0x70] sm:$0xff] }
  0xb3   :  { %1488 = vmatpush3.bf16.msra.mxu1 %v1875_v42  ;;  %1458 = vmatprep.subr.bf16.mxu0 %v1877_v43  ;;  %v821_v42 = vld [vmem:[#allocation9 + $0x78] sm:$0xff] }
  0xb4   :  { %1490 = vmatprep.subr.bf16.mxu1 %v2057_v16  ;;  %v1535_v43 = vpack.c.bf16 %v821_v42, %v820_v41 }
  0xb6   :  { %1460 = vmatpush3.bf16.msra.mxu0 %v2058_v17 }
  0xb7   :  { %1492 = vmatpush3.bf16.msra.mxu1 %v1887_v4  ;;  %1462 = vmatprep.subr.bf16.mxu0 %v2059_v21  ;;  %v1679_v4 = vmov 0.0  }
  0xb8   :  { %1494 = vmatprep.subr.bf16.mxu1 %v2060_v26 }
  0xba   :  { %1464 = vmatpush3.bf16.msra.mxu0 %v2061_v27 }
  0xbb   :  { %1496 = vmatpush3.bf16.msra.mxu1 %v2062_v31  ;;  %1466 = vmatprep.subr.bf16.mxu0 %v2063_v35 }
  0xbc   :  { %1498 = vmatprep.subr.bf16.mxu1 %v2064_v39 }
  0xbe   :  { %1468 = vmatpush3.bf16.msra.mxu0 %v2065_v40 }
  0xbf   :  { %1500 = vmatpush3.bf16.msra.mxu1 %v1914_v24  ;;  %1470 = vmatprep.subr.bf16.mxu0 %v2066_v44  ;;  %v1680_v44 = vmov 1.0  }
  0xc0   :  { %1502 = vmatprep.subr.bf16.mxu1 %v1919_v46 }
  0xc2   :  { %1472 = vmatpush3.bf16.msra.mxu0 %v1922_v59 }
  0xc3   :  { %1504 = vmatpush3.bf16.msra.mxu1 %v1926_v62  ;;  %1474 = vmatprep.subr.bf16.mxu0 %v1928_v9 }
  0xc4   :  { %1506 = vmatprep.subr.bf16.mxu1 %v1931_v23 }
  0xc6   :  { %1476 = vmatpush3.bf16.msra.mxu0 %v1934_v29 }
  0xc7   :  { %1508 = vmatpush3.bf16.msra.mxu1 %v1938_v33  ;;  %1478 = vmatprep.subr.bf16.mxu0 %v1940_v34 }
  0xc8   :  { %1510 = vmatprep.subr.bf16.mxu1 %v1943_v50 }
  0xca   :  { %1480 = vmatpush3.bf16.msra.mxu0 %v1946_v49 }
  0xcb   :  { %1512 = vmatpush3.bf16.msra.mxu1 %v1950_v60  ;;  %1513 = vmatprep.subr.bf16.mxu0 %v1677_v0 }
  0xcd   :  { %707 = vmatmul.mubr.f32.vlgmr.msra.gmra.mrb[6].mxu0 %v498_v51 }
  0xce   :  { %777 = vmatmul.mubr.f32.vlgmr.msra.gmra.mrb[6].mxu1 %v500_v52  ;;  %1515 = vmatpush3.bf16.msra.mxu0 %v1514_v1 }
  0xcf   :  { %1516 = vmatprep.subr.bf16.mxu0 %v1677_v0  ;;  %1254 = vmatprep.mubr.msk.f32.mxu0 %vm1678_vm0, %v1679_v4 }
  0xd2   :  { %1518 = vmatpush3.bf16.msra.mxu0 %v1517_v15 }
  0xd3   :  { %1519 = vmatprep.subr.bf16.mxu0 %v1677_v0 }
  0xd6   :  { %1521 = vmatpush3.bf16.msra.mxu0 %v1520_v28 }
  0xd7   :  { %1522 = vmatprep.subr.bf16.mxu0 %v1677_v0 }
  0xda   :  { %1524 = vmatpush3.bf16.msra.mxu0 %v1523_v38 }
  0xdb   :  { %1525 = vmatprep.subr.bf16.mxu0 %v1677_v0 }
  0xde   :  { %1527 = vmatpush3.bf16.msra.mxu0 %v1526_v55 }
  0xdf   :  { %1528 = vmatprep.subr.bf16.mxu0 %v1677_v0 }
  0xe2   :  { %1530 = vmatpush3.bf16.msra.mxu0 %v1529_v13 }
  0xe3   :  { %1531 = vmatprep.subr.bf16.mxu0 %v1677_v0 }
  0xe6   :  { %1533 = vmatpush3.bf16.msra.mxu0 %v1532_v25 }
  0xe7   :  { %1534 = vmatprep.subr.bf16.mxu0 %v1677_v0 }
  0xea   :  { %1536 = vmatpush3.bf16.msra.mxu0 %v1535_v43 }
  0xf0   :  { %v786_v17 = vpop.permute.xlu0 %785 }
  0xf9   :  { %v793_v31 = vpop.permute.xlu0 %792 }
 0x140   :  { %v957_v24 = vpop.f32.mrb[0].mxu0 }
 0x141   :  { %v992_v29 = vpop.f32.mrb[0].mxu1  ;;  %v958_v46 = vpop.f32.mrb[1].mxu0 }
 0x142   :  { %v959_v59 = vadd.f32 %v958_v46, %v957_v24  ;;  %v993_v62 = vpop.f32.mrb[1].mxu1 }
 0x143   :  { %v994_v9 = vadd.f32 %v993_v62, %v992_v29 }
 0x145   :  { %v351_v23 = vadd.f32 %v994_v9, %v959_v59 }
 0x160   :  { %v1027_v30 = vpop.f32.mrb[2].mxu0 }
 0x161   :  { %v1028_v32 = vpop.f32.mrb[3].mxu0  ;;  %v1062_v33 = vpop.f32.mrb[2].mxu1 }
 0x162   :  { %v1029_v34 = vadd.f32 %v1028_v32, %v1027_v30  ;;  %v1063_v5 = vpop.f32.mrb[3].mxu1 }
 0x163   :  { %v1064_v47 = vadd.f32 %v1063_v5, %v1062_v33 }
 0x164   :  { %v421_v50 = vadd.f32 %v1029_v34, %v351_v23 }
 0x166   :  { %v491_v19 = vadd.f32 %v1064_v47, %v421_v50 }
 0x168   :  { %v788_v35 = vmul.f32 %v786_v17, %v491_v19 }
 0x180   :  { %v1097_v58 = vpop.f32.mrb[4].mxu0 }
 0x181   :  { %v1132_v49 = vpop.f32.mrb[4].mxu1  ;;  %v1098_v60 = vpop.f32.mrb[5].mxu0 }
 0x182   :  { %v1099_v48 = vadd.f32 %v1098_v60, %v1097_v58  ;;  %v1133_v11 = vpop.f32.mrb[5].mxu1 }
 0x183   :  { %v1134_v2 = vadd.f32 %v1133_v11, %v1132_v49 }
 0x185   :  { %v639_v10 = vadd.f32 %v1134_v2, %v1099_v48 }
 0x1a0   :  { %v1167_v3 = vpop.f32.mrb[6].mxu0 }
 0x1a1   :  { %v1168_v7 = vpop.f32.mrb[7].mxu0  ;;  %v1202_v8 = vpop.f32.mrb[6].mxu1 }
 0x1a2   :  { %v1169_v12 = vadd.f32 %v1168_v7, %v1167_v3  ;;  %v1203_v16 = vpop.f32.mrb[7].mxu1 }
 0x1a3   :  { %v1204_v21 = vadd.f32 %v1203_v16, %v1202_v8 }
 0x1a4   :  { %v709_v26 = vadd.f32 %v1169_v12, %v639_v10 }
 0x1a6   :  { %v779_v27 = vadd.f32 %v1204_v21, %v709_v26 }
 0x1a8   :  { %v795_v39 = vmul.f32 %v793_v31, %v779_v27 }
 0x1aa   :  { %v796_v40 = vadd.f32 %v795_v39, %v788_v35 }
 0x1ac   :  { %vm803_vm1 = vcmp.gt.f32.partialorder %v796_v40, 0.0 }
 0x1ad   :  { %1255 = vmatmul.mubr.msk.f32.vlgmr.msra.gmra.mrb[8].mxu0 %vm803_vm1, %v1680_v44  ;;  %v922_v52 = vsel %vm803_vm1, 1.0, %v1679_v4 }
 0x280   :  { %v888_v51 = vpop.f32.mrb[8].mxu0 }
 0x281   :  { %v1256_v53 = vpop.f32.mrb[9].mxu0  ;;  %v892_v57 = vmul.f32 %v922_v52, %v888_v51 }
 0x283   :  { %893 = vadd.xlane.f32.xlu1 %v892_v57 }
 0x310   :  { %v894_v63 = vpop.xlane.xlu1 %893 }
 0x311   :  { %1550 = vrsqrt.f32 %v894_v63  ;;  %vm897_vm2 = vcmp.eq.f32.partialorder %v894_v63, inf  ;;  %v900_v6 = vand.u32 2147483648, %v894_v63  ;;  %vm899_vm3 = vcmp.eq.f32.partialorder %v894_v63, 0.0 }
 0x31b   :  { %v1551_v0 = vpop.eup %1550 }
 0x31c   :  { %v896_v1 = vmul.f32 %v1551_v0, %v894_v63 }
 0x31e   :  { %v898_v15 = vsel %vm897_vm2, %v894_v63, %v896_v1 }
 0x31f   :  { %v901_v20 = vsel %vm899_vm3, %v900_v6, %v898_v15 }
 0x320   :  { %v924_v22 = vadd.f32 -1.0, %v901_v20 }
 0x322   :  { %v903_v28 = vmul.f32 %v924_v22, %v924_v22 }
 0x324   :  { %904 = vst [vmem:[#allocation11] sm:$0xff] %v903_v28 }
 0x325   :  { %1651 = shalt.err (!%p1648_p8)
}
 0x326   :  { %s1652_s19 = scalar_lea.hbm %s2036_s5, 128 }
 0x327   :  { %p1653_p9 = scmp.ne.s32.totalorder %s2036_s5, %s1652_s19  ;;  %p1656_p10 = scmp.lt.u32.totalorder %s1652_s19, %s2036_s5 }
 0x329   :  { %p1658_p11 = pnand %p1656_p10, %p1653_p9 }
 0x32b   :  { %1661 = shalt.err (!%p1658_p11)
}
 0x32c   :  { %914 = dma.vmem_to_hbm [thread:$0]  %s912_s15, 128, %s2036_s5, [#allocation5]  }
 0x32d   :  { %1668 = dma.done.wait [#allocation5], 128  }
 0x32e   :  { %1669 = vsyncadd [#allocation5], 4294967168 }
 0x32f   :  { %918 = vsyncpa [#allocation4], 1 }
 0x330   :  { %919 = vsyncpa [#allocation7], 1 }
 0x331   :  { %920 = vsyncpa [#allocation10], 1 }
 0x332   :  { %921 = vsyncpa [#allocation5], 1 }

</bundles_post_ra>
